<compile_context>
chip_gen: v5e
topology: v5e:2x2
jax: 0.10.0
libtpu: 0.0.40
codegen_flags: <defaults>
</compile_context>

<pallas_src>
import functools

import jax
import jax.numpy as jnp
from jax.experimental import pallas as pl
from jax.experimental.pallas import tpu as pltpu


# ----------------------------------------------------------------------------
# helpers
# ----------------------------------------------------------------------------
def _round_up(x, m):
    return (x + m - 1) // m * m


def _cdiv(a, b):
    return -(-a // b)


def _pick_h_tile(n_imgs, h, wp2, cop, min_steps=4, max_tile_bytes=4 << 20):
    """Output-row tile th (always divides h): aim for >= min_steps grid steps
    (v7x has 2 TensorCores) while keeping the f32 output tile small."""
    th = h
    while th > 1 and (n_imgs * (h // th) < min_steps
                      or th * wp2 * cop * 4 > max_tile_bytes):
        if th % 2 == 0:
            th //= 2
        else:
            break
    return th


# ----------------------------------------------------------------------------
# Kernel: one (image, h-tile) step of  y = act(conv3x3_reparam(x) + bias)
#   x_ref : (1, flat_p, Cip)  bf16   halo-padded image, rows flattened (H+2)x(W+2)
#   w_ref : (9, Cip, Cop)     bf16   re-parameterized 3x3 weights (tap-major)
#   b_ref : (1, Cop)          f32    folded bias
#   o_ref : (1, th*Wp2, Cop)  f32    "wide" output rows (2 garbage cols sliced off later)
# ----------------------------------------------------------------------------
def _repvgg_kernel(x_ref, w_ref, b_ref, o_ref, *, lt, lw, wp2, act):
    j = pl.program_id(1)
    base = j * lt
    if lt % 8 == 0:
        base = pl.multiple_of(base, 8)

    # One aligned dynamic slice loads this tile's halo window; the 9 taps are
    # then cheap *static* shifted slices of that value (no HBM im2col).
    win = x_ref[0, pl.ds(base, lw), :]                      # (lw, Cip) bf16

    acc = None
    for dh in range(3):
        for dw in range(3):
            t = dh * 3 + dw
            off = dh * wp2 + dw
            xs = win[off:off + lt, :]                       # (lt, Cip) static slice
            p = jnp.dot(xs, w_ref[t], preferred_element_type=jnp.float32)
            acc = p if acc is None else acc + p

    y = acc + b_ref[...]                                    # f32 bias add
    if act == "relu":
        y = jnp.maximum(y, 0.0)
    elif act == "silu":
        y = y * pl.reciprocal(1.0 + jnp.exp(-y), approx=True)
    elif act in (None, "identity"):
        pass
    else:
        raise NotImplementedError(f"activation {act!r} not supported")
    o_ref[0, :, :] = y.astype(o_ref.dtype)


# ----------------------------------------------------------------------------
# Parameter init (deterministic): BN folding (running stats) + RepVgg re-param.
# ----------------------------------------------------------------------------
def init_repvgg_params(key, ch_in, ch_out, act="relu", eps=1e-5):
    cop = _round_up(ch_out, 128)      # lane-dense output channels
    cip = _round_up(ch_in, 8)         # tidy sublane-sized contracting dim
    ks = jax.random.split(key, 4)

    def bn_fold(k, cout_):
        a, b_, c, d = jax.random.split(k, 4)
        gamma = 1.0 + 0.1 * jax.random.normal(a, (cout_,), jnp.float32)
        beta = 0.1 * jax.random.normal(b_, (cout_,), jnp.float32)
        mean = 0.1 * jax.random.normal(c, (cout_,), jnp.float32)
        var = 1.0 + 0.1 * jax.random.uniform(d, (cout_,), jnp.float32)
        scale = gamma / jnp.sqrt(var + eps)
        return scale, beta - mean * scale

    w3 = 0.1 * jax.random.normal(ks[0], (3, 3, ch_in, ch_out), jnp.float32)  # HWIO
    w1 = 0.2 * jax.random.normal(ks[1], (ch_in, ch_out), jnp.float32)
    s3, b3 = bn_fold(ks[2], ch_out)
    s1, b1 = bn_fold(ks[3], ch_out)
    w3_eff = w3 * s3
    w1_eff = w1 * s1

    # Exact RepVgg re-parameterization: conv3x3+BN plus conv1x1+BN is a single
    # 3x3 conv with the 1x1 weights added to the center tap (module's own
    # get_equivalent_kernel_bias()).
    w_fold = w3_eff.at[1, 1].add(w1_eff)
    b_fold = b3 + b1

    w_pad = (jnp.zeros((3, 3, cip, cop), jnp.float32)
             .at[:, :, :ch_in, :ch_out].set(w_fold))
    return {
        "cop": cop, "cip": cip, "cout": ch_out, "cin": ch_in, "act": act,
        "w": w_pad.reshape(9, cip, cop).astype(jnp.bfloat16),
        "b": jnp.zeros((1, cop), jnp.float32).at[0, :ch_out].set(b_fold),
        "ref": {"w3": w3_eff, "b3": b3, "w1": w1_eff, "b1": b1},
    }


# ----------------------------------------------------------------------------
# Forward (single fused pallas_call)
# ----------------------------------------------------------------------------
def repvgg_forward(x_nchw, params):
    n, cin, h, w = x_nchw.shape
    cop, cout, cip, act = params["cop"], params["cout"], params["cip"], params["act"]
    wp2, hp2 = w + 2, h + 2

    th = _pick_h_tile(n, h, wp2, cop)
    n_h = h // th
    lt = th * wp2                              # output rows per grid step
    lw = _round_up((th + 2) * wp2 + 2, 8)      # halo-window rows per grid step
    needed = (n_h - 1) * lt + lw
    extra_rows = max(0, _cdiv(needed - hp2 * wp2, wp2))
    flat_p = (hp2 + extra_rows) * wp2

    # Single data-prep op: NCHW->NHWC bf16, 1px halo pad, tiny channel pad, and
    # a few zero tail rows so the last tile's halo window stays in bounds.
    x_nhwc = jnp.transpose(x_nchw, (0, 2, 3, 1)).astype(jnp.bfloat16)
    xp = jnp.pad(x_nhwc, ((0, 0), (1, 1 + extra_rows), (1, 1), (0, cip - cin)))
    xf = xp.reshape(n, flat_p, cip)

    # Explicit VMEM budget (double-buffered blocks + f32 temporaries).
    est = (2 * flat_p * cip * 2 + 2 * 9 * cip * cop * 2 + 2 * cop * 4
           + 2 * lt * cop * 4 + 6 * lt * cop * 4)
    vmem_limit = int(min(max(4 * est, 32 << 20), 48 << 20))

    kernel = functools.partial(_repvgg_kernel, lt=lt, lw=lw, wp2=wp2, act=act)
    out = pl.pallas_call(
        kernel,
        out_shape=jax.ShapeDtypeStruct((n * n_h, lt, cop), jnp.float32),
        grid=(n, n_h),
        in_specs=[
            pl.BlockSpec((1, flat_p, cip), lambda i, j: (i, 0, 0)),  # image, VMEM-resident over j
            pl.BlockSpec((9, cip, cop), lambda i, j: (0, 0, 0)),     # weights, resident
            pl.BlockSpec((1, cop), lambda i, j: (0, 0)),             # bias
        ],
        out_specs=pl.BlockSpec((1, lt, cop), lambda i, j: (i * n_h + j, 0, 0)),
        compiler_params=pltpu.CompilerParams(
            dimension_semantics=("parallel", "parallel"),
            vmem_limit_bytes=vmem_limit),
    )(xf, params["w"], params["b"])

    y = out.reshape(n, h, wp2, cop)[:, :, :w, :cout]   # drop 2 "wide" cols + padded channels
    return jnp.transpose(y, (0, 3, 1, 2))              # NHWC -> NCHW


# ----------------------------------------------------------------------------
# Pure-JAX reference: the two branches computed SEPARATELY (validates the
# re-parameterization) with the same bf16-operand / f32-accumulate policy.
# ----------------------------------------------------------------------------
def repvgg_reference(x_nchw, params):
    r, act = params["ref"], params["act"]
    x = jnp.transpose(x_nchw, (0, 2, 3, 1)).astype(jnp.bfloat16)
    n, h, w, _ = x.shape
    xp = jnp.pad(x, ((0, 0), (1, 1), (1, 1), (0, 0)))
    w3 = r["w3"].astype(jnp.bfloat16)
    acc = jnp.zeros((n, h, w, r["w3"].shape[-1]), jnp.float32)
    for dh in range(3):
        for dw in range(3):
            acc = acc + jnp.einsum("nhwc,cd->nhwd", xp[:, dh:dh + h, dw:dw + w, :],
                                   w3[dh, dw], preferred_element_type=jnp.float32)
    y3 = acc + r["b3"]
    y1 = jnp.einsum("nhwc,cd->nhwd", x, r["w1"].astype(jnp.bfloat16),
                    preferred_element_type=jnp.float32) + r["b1"]
    y = y3 + y1
    if act == "relu":
        y = jnp.maximum(y, 0.0)
    elif act == "silu":
        y = y * jax.nn.sigmoid(y)
    return jnp.transpose(y, (0, 3, 1, 2))


if __name__ == "__main__":
    N, Cin, H, W = 2, 4, 16, 16
    Cout = 16

    key = jax.random.PRNGKey(0)
    kx, kp = jax.random.split(key)
    x = jax.random.normal(kx, (N, Cin, H, W), jnp.float32)
    params = init_repvgg_params(kp, Cin, Cout, act="relu")

    fwd = jax.jit(lambda inp: repvgg_forward(inp, params))
    out = jax.block_until_ready(fwd(x))
    ref = repvgg_reference(x, params)

    assert out.shape == (N, Cout, H, W)
    assert out.dtype == jnp.float32
    assert jnp.allclose(out, ref, atol=2e-2, rtol=2e-2), "mismatch vs JAX reference"

    print("KERNEL_OK")
</pallas_src>

<mosaic_0001>
module attributes {stable_mosaic.version = 11 : i64} {
  func.func @_repvgg_kernel(%arg0: i32, %arg1: i32, %arg2: memref<1x342x8xbf16, #tpu.memory_space<vmem>>, %arg3: memref<9x8x128xbf16, #tpu.memory_space<vmem>>, %arg4: memref<1x128xf32, #tpu.memory_space<vmem>>, %arg5: memref<1x144x128xf32, #tpu.memory_space<vmem>>) attributes {dimension_semantics = [#tpu.dimension_semantics<parallel>, #tpu.dimension_semantics<parallel>], iteration_bounds = array<i64: 2, 2>, scalar_prefetch = 0 : i64, scratch_operands = 0 : i64, tpu.core_type = #tpu.core_type<tc>, window_params = [{transform_indices = @transform_0, window_bounds = array<i64: 1, 342, 8>}, {pipeline_mode = #tpu.pipeline_mode<synchronous>, transform_indices = @transform_1, window_bounds = array<i64: 9, 8, 128>}, {pipeline_mode = #tpu.pipeline_mode<synchronous>, transform_indices = @transform_2, window_bounds = array<i64: 1, 128>}, {transform_indices = @transform_3, window_bounds = array<i64: 1, 144, 128>}]} {
    %c144_i32 = arith.constant 144 : i32
    %0 = arith.muli %arg1, %c144_i32 : i32
    %1 = tpu.assume_multiple %0, 8 : i32
    %c0 = arith.constant 0 : index
    %2 = arith.index_cast %1 : i32 to index
    %c0_0 = arith.constant 0 : index
    %3 = vector.load %arg2[%c0, %2, %c0_0] : memref<1x342x8xbf16, #tpu.memory_space<vmem>>, vector<1x184x8xbf16>
    %4 = vector.shape_cast %3 : vector<1x184x8xbf16> to vector<184x8xbf16>
    %5 = vector.extract_strided_slice %4 {offsets = [0, 0], sizes = [144, 8], strides = [1, 1]} : vector<184x8xbf16> to vector<144x8xbf16>
    %c0_1 = arith.constant 0 : index
    %c0_2 = arith.constant 0 : index
    %c0_3 = arith.constant 0 : index
    %6 = vector.load %arg3[%c0_1, %c0_2, %c0_3] : memref<9x8x128xbf16, #tpu.memory_space<vmem>>, vector<1x8x128xbf16>
    %7 = vector.shape_cast %6 : vector<1x8x128xbf16> to vector<8x128xbf16>
    %cst = arith.constant dense<0.000000e+00> : vector<144x128xf32>
    %8 = tpu.matmul %5, %7, %cst {dimension_numbers = #tpu.dot_dimension_numbers<[1], [0], [0], [1], [0, 0, 1, 1], [], []>} : vector<144x8xbf16>, vector<8x128xbf16>, vector<144x128xf32> -> vector<144x128xf32>
    %9 = vector.extract_strided_slice %4 {offsets = [1, 0], sizes = [144, 8], strides = [1, 1]} : vector<184x8xbf16> to vector<144x8xbf16>
    %c1 = arith.constant 1 : index
    %c0_4 = arith.constant 0 : index
    %c0_5 = arith.constant 0 : index
    %10 = vector.load %arg3[%c1, %c0_4, %c0_5] : memref<9x8x128xbf16, #tpu.memory_space<vmem>>, vector<1x8x128xbf16>
    %11 = vector.shape_cast %10 : vector<1x8x128xbf16> to vector<8x128xbf16>
    %cst_6 = arith.constant dense<0.000000e+00> : vector<144x128xf32>
    %12 = tpu.matmul %9, %11, %cst_6 {dimension_numbers = #tpu.dot_dimension_numbers<[1], [0], [0], [1], [0, 0, 1, 1], [], []>} : vector<144x8xbf16>, vector<8x128xbf16>, vector<144x128xf32> -> vector<144x128xf32>
    %13 = arith.addf %8, %12 : vector<144x128xf32>
    %14 = vector.extract_strided_slice %4 {offsets = [2, 0], sizes = [144, 8], strides = [1, 1]} : vector<184x8xbf16> to vector<144x8xbf16>
    %c2 = arith.constant 2 : index
    %c0_7 = arith.constant 0 : index
    %c0_8 = arith.constant 0 : index
    %15 = vector.load %arg3[%c2, %c0_7, %c0_8] : memref<9x8x128xbf16, #tpu.memory_space<vmem>>, vector<1x8x128xbf16>
    %16 = vector.shape_cast %15 : vector<1x8x128xbf16> to vector<8x128xbf16>
    %cst_9 = arith.constant dense<0.000000e+00> : vector<144x128xf32>
    %17 = tpu.matmul %14, %16, %cst_9 {dimension_numbers = #tpu.dot_dimension_numbers<[1], [0], [0], [1], [0, 0, 1, 1], [], []>} : vector<144x8xbf16>, vector<8x128xbf16>, vector<144x128xf32> -> vector<144x128xf32>
    %18 = arith.addf %13, %17 : vector<144x128xf32>
    %19 = vector.extract_strided_slice %4 {offsets = [18, 0], sizes = [144, 8], strides = [1, 1]} : vector<184x8xbf16> to vector<144x8xbf16>
    %c3 = arith.constant 3 : index
    %c0_10 = arith.constant 0 : index
    %c0_11 = arith.constant 0 : index
    %20 = vector.load %arg3[%c3, %c0_10, %c0_11] : memref<9x8x128xbf16, #tpu.memory_space<vmem>>, vector<1x8x128xbf16>
    %21 = vector.shape_cast %20 : vector<1x8x128xbf16> to vector<8x128xbf16>
    %cst_12 = arith.constant dense<0.000000e+00> : vector<144x128xf32>
    %22 = tpu.matmul %19, %21, %cst_12 {dimension_numbers = #tpu.dot_dimension_numbers<[1], [0], [0], [1], [0, 0, 1, 1], [], []>} : vector<144x8xbf16>, vector<8x128xbf16>, vector<144x128xf32> -> vector<144x128xf32>
    %23 = arith.addf %18, %22 : vector<144x128xf32>
    %24 = vector.extract_strided_slice %4 {offsets = [19, 0], sizes = [144, 8], strides = [1, 1]} : vector<184x8xbf16> to vector<144x8xbf16>
    %c4 = arith.constant 4 : index
    %c0_13 = arith.constant 0 : index
    %c0_14 = arith.constant 0 : index
    %25 = vector.load %arg3[%c4, %c0_13, %c0_14] : memref<9x8x128xbf16, #tpu.memory_space<vmem>>, vector<1x8x128xbf16>
    %26 = vector.shape_cast %25 : vector<1x8x128xbf16> to vector<8x128xbf16>
    %cst_15 = arith.constant dense<0.000000e+00> : vector<144x128xf32>
    %27 = tpu.matmul %24, %26, %cst_15 {dimension_numbers = #tpu.dot_dimension_numbers<[1], [0], [0], [1], [0, 0, 1, 1], [], []>} : vector<144x8xbf16>, vector<8x128xbf16>, vector<144x128xf32> -> vector<144x128xf32>
    %28 = arith.addf %23, %27 : vector<144x128xf32>
    %29 = vector.extract_strided_slice %4 {offsets = [20, 0], sizes = [144, 8], strides = [1, 1]} : vector<184x8xbf16> to vector<144x8xbf16>
    %c5 = arith.constant 5 : index
    %c0_16 = arith.constant 0 : index
    %c0_17 = arith.constant 0 : index
    %30 = vector.load %arg3[%c5, %c0_16, %c0_17] : memref<9x8x128xbf16, #tpu.memory_space<vmem>>, vector<1x8x128xbf16>
    %31 = vector.shape_cast %30 : vector<1x8x128xbf16> to vector<8x128xbf16>
    %cst_18 = arith.constant dense<0.000000e+00> : vector<144x128xf32>
    %32 = tpu.matmul %29, %31, %cst_18 {dimension_numbers = #tpu.dot_dimension_numbers<[1], [0], [0], [1], [0, 0, 1, 1], [], []>} : vector<144x8xbf16>, vector<8x128xbf16>, vector<144x128xf32> -> vector<144x128xf32>
    %33 = arith.addf %28, %32 : vector<144x128xf32>
    %34 = vector.extract_strided_slice %4 {offsets = [36, 0], sizes = [144, 8], strides = [1, 1]} : vector<184x8xbf16> to vector<144x8xbf16>
    %c6 = arith.constant 6 : index
    %c0_19 = arith.constant 0 : index
    %c0_20 = arith.constant 0 : index
    %35 = vector.load %arg3[%c6, %c0_19, %c0_20] : memref<9x8x128xbf16, #tpu.memory_space<vmem>>, vector<1x8x128xbf16>
    %36 = vector.shape_cast %35 : vector<1x8x128xbf16> to vector<8x128xbf16>
    %cst_21 = arith.constant dense<0.000000e+00> : vector<144x128xf32>
    %37 = tpu.matmul %34, %36, %cst_21 {dimension_numbers = #tpu.dot_dimension_numbers<[1], [0], [0], [1], [0, 0, 1, 1], [], []>} : vector<144x8xbf16>, vector<8x128xbf16>, vector<144x128xf32> -> vector<144x128xf32>
    %38 = arith.addf %33, %37 : vector<144x128xf32>
    %39 = vector.extract_strided_slice %4 {offsets = [37, 0], sizes = [144, 8], strides = [1, 1]} : vector<184x8xbf16> to vector<144x8xbf16>
    %c7 = arith.constant 7 : index
    %c0_22 = arith.constant 0 : index
    %c0_23 = arith.constant 0 : index
    %40 = vector.load %arg3[%c7, %c0_22, %c0_23] : memref<9x8x128xbf16, #tpu.memory_space<vmem>>, vector<1x8x128xbf16>
    %41 = vector.shape_cast %40 : vector<1x8x128xbf16> to vector<8x128xbf16>
    %cst_24 = arith.constant dense<0.000000e+00> : vector<144x128xf32>
    %42 = tpu.matmul %39, %41, %cst_24 {dimension_numbers = #tpu.dot_dimension_numbers<[1], [0], [0], [1], [0, 0, 1, 1], [], []>} : vector<144x8xbf16>, vector<8x128xbf16>, vector<144x128xf32> -> vector<144x128xf32>
    %43 = arith.addf %38, %42 : vector<144x128xf32>
    %44 = vector.extract_strided_slice %4 {offsets = [38, 0], sizes = [144, 8], strides = [1, 1]} : vector<184x8xbf16> to vector<144x8xbf16>
    %c8 = arith.constant 8 : index
    %c0_25 = arith.constant 0 : index
    %c0_26 = arith.constant 0 : index
    %45 = vector.load %arg3[%c8, %c0_25, %c0_26] : memref<9x8x128xbf16, #tpu.memory_space<vmem>>, vector<1x8x128xbf16>
    %46 = vector.shape_cast %45 : vector<1x8x128xbf16> to vector<8x128xbf16>
    %cst_27 = arith.constant dense<0.000000e+00> : vector<144x128xf32>
    %47 = tpu.matmul %44, %46, %cst_27 {dimension_numbers = #tpu.dot_dimension_numbers<[1], [0], [0], [1], [0, 0, 1, 1], [], []>} : vector<144x8xbf16>, vector<8x128xbf16>, vector<144x128xf32> -> vector<144x128xf32>
    %48 = arith.addf %43, %47 : vector<144x128xf32>
    %c0_28 = arith.constant 0 : index
    %c0_29 = arith.constant 0 : index
    %49 = vector.load %arg4[%c0_28, %c0_29] : memref<1x128xf32, #tpu.memory_space<vmem>>, vector<1x128xf32>
    %50 = vector.broadcast %49 : vector<1x128xf32> to vector<144x128xf32>
    %51 = arith.addf %48, %50 : vector<144x128xf32>
    %cst_30 = arith.constant 0.000000e+00 : f32
    %52 = vector.broadcast %cst_30 : f32 to vector<144x128xf32>
    %53 = arith.maximumf %51, %52 : vector<144x128xf32>
    %c0_31 = arith.constant 0 : index
    %c0_32 = arith.constant 0 : index
    %c0_33 = arith.constant 0 : index
    %54 = vector.load %arg5[%c0_31, %c0_32, %c0_33] : memref<1x144x128xf32, #tpu.memory_space<vmem>>, vector<1x144x128xf32>
    %55 = vector.shape_cast %54 : vector<1x144x128xf32> to vector<144x128xf32>
    %56 = vector.shape_cast %53 : vector<144x128xf32> to vector<1x144x128xf32>
    tpu.vector_store %arg5[%c0_31, %c0_32, %c0_33], %56 {strides = array<i32>} : memref<1x144x128xf32, #tpu.memory_space<vmem>>, vector<1x144x128xf32>,
    return
  }
  func.func @transform_0(%arg0: i32, %arg1: i32) -> (i32, i32, i32) {
    %c0_i32 = arith.constant 0 : i32
    %c0_i32_0 = arith.constant 0 : i32
    %c0_i32_1 = arith.constant 0 : i32
    return %arg0, %c0_i32, %c0_i32_0 : i32, i32, i32
  }
  func.func @transform_1(%arg0: i32, %arg1: i32) -> (i32, i32, i32) {
    %c0_i32 = arith.constant 0 : i32
    %c0_i32_0 = arith.constant 0 : i32
    %c0_i32_1 = arith.constant 0 : i32
    %c0_i32_2 = arith.constant 0 : i32
    return %c0_i32, %c0_i32_0, %c0_i32_1 : i32, i32, i32
  }
  func.func @transform_2(%arg0: i32, %arg1: i32) -> (i32, i32) {
    %c0_i32 = arith.constant 0 : i32
    %c0_i32_0 = arith.constant 0 : i32
    %c0_i32_1 = arith.constant 0 : i32
    return %c0_i32, %c0_i32_0 : i32, i32
  }
  func.func @transform_3(%arg0: i32, %arg1: i32) -> (i32, i32, i32) {
    %c2_i32 = arith.constant 2 : i32
    %0 = arith.muli %arg0, %c2_i32 : i32
    %1 = arith.addi %0, %arg1 : i32
    %c0_i32 = arith.constant 0 : i32
    %c0_i32_0 = arith.constant 0 : i32
    %c0_i32_1 = arith.constant 0 : i32
    return %1, %c0_i32, %c0_i32_0 : i32, i32, i32
  }
}

</mosaic_0001>

<bundles_post_ra>
// kernel: _lambda_.1
= control target key start
LH: loop header
LB: loop body
LE: loop exit
PB: predicated region body
PF: predicated region fallthrough
CT: control target
= control target key end

     0   :  { %s1773_s12 = smov 0   ;;  %s1775_s13 = smov 0   ;;  %s2369_s0 = inlined_call_operand.vmem [shape: bf16[2,342,8], index: 0, kind: input, shape index: {}]   ;;  %s2370_s1 = inlined_call_operand.vmem [shape: bf16[9,8,128], index: 1, kind: input, shape index: {}]   ;;  %s2371_s2 = inlined_call_operand.vmem [shape: f32[1,128], index: 2, kind: input, shape index: {}]   ;;  %s2372_s3 = inlined_call_operand.vmem [shape: f32[4,144,128], index: 3, kind: output, shape index: {}]  }
   0x1   :  { %s1777_s14 = smov 0   ;;  %s1779_s15 = smov 0  }
   0x2   :  { %s1781_s16 = smov 0  }
   0x3 LB: > { %s22_s17 = sadd.s32 1, %s1743_s14  ;;  %s25_s18 = sadd.s32 1, %s1747_s15  ;;  %s1751_s16 = sphi %s1781_s16, %s13_s16   ;;  %s1747_s15 = sphi %s1779_s15, %s2376_s15   ;;  %s1743_s14 = sphi %s1777_s14, %s2375_s14   ;;  %s1739_s13 = sphi %s1775_s13, %s2374_s13   ;;  %s1735_s12 = sphi %s1773_s12, %s2373_s12  }
   0x4   : > { %p23_p0 = scmp.ge.s32.totalorder %s22_s17, 2  ;;  %p1516_p1 = scmp.ge.s32.totalorder %s1751_s16, 1 }
   0x5   : > { %p153_p2 = scmp.lt.s32.totalorder %s1751_s16, 5 }
   0x6   : > { %s2378_s17 = smov (%p23_p0, %s22_s17), 0  ;;  %s2380_s18 = smov (!%p23_p0, %s25_s18), %s1747_s15 }
   0x7   : > { %p154_p3 = pnand %p1516_p1, %p153_p2  ;;  %p27_p4 = scmp.ge.s32.totalorder %s2380_s18, 2 }
   0x8   : > { %p179_p5 = scmp.lt.s32.totalorder (!%p154_p3), %s1739_s13, 1  ;;  %s194_s21 = smul.u32 (!%p154_p3), 144, %s1735_s12 }
   0x9   : > { %s2382_s18 = smov (%p27_p4, %s2380_s18), 0  ;;  %157 = sbr.rel (%p154_p3) target bundleno = 500 (0x1f4), region = 32 }
   0xa   : > { %s195_s29 = sshra.s32 (!%p154_p3), %s194_s21, 3  ;;  %s1518_s26 = sshll.u32 (!%p154_p3), %s1739_s13, 1 }
   0xb   : > { %s1520_s4 = sshll.u32 (!%p154_p3), %s195_s29, 2  ;;  %s185_s27 = sadd.s32 (!%p154_p3), %s1735_s12, %s1518_s26 }
   0xc   : > { %p186_p6 = scmp.lt.s32.totalorder (!%p154_p3), %s185_s27, 3 }
   0xe   : > { %v1521_v0 = vld [vmem:[%s2370_s1 + $0x4] sm:$0xf]  ;;  %vm378_vm0 = vcmask 1043456   ;;  %v1576_v2 = vld [vmem:[%s2370_s1 + $0x8] sm:$0xf]  ;;  %s180_s24 = scalar_select %p179_p5, %s1739_s13, 1 }
   0xf   : > { %v380_v1 = vsel %vm378_vm0, %v1521_v0, 0  ;;  %v561_v3 = vsel %vm378_vm0, %v1576_v2, 0  ;;  %v222_v4 = vld [vmem:[%s2370_s1] sm:$0xf]  ;;  %v1586_v5 = vld [vmem:[%s2370_s1 + $0xc] sm:$0xf] }
  0x10   : > { %1667 = vmatpush.bf16.msra.mxu1 %v380_v1  ;;  %1668 = vmatpush.bf16.msra.mxu2 %v380_v1  ;;  %v455_v6 = vsel %vm378_vm0, %v222_v4, 0  ;;  %v654_v7 = vsel %vm378_vm0, %v1586_v5, 0  ;;  %s1670_s30 = smul.u32 172, %s180_s24  ;;  %vm273_vm1 = vsmask.f32 7424  ;;  %vm350_vm2 = vcmask 64512  }
  0x11   : > { %1669 = vmatpush.bf16.msra.mxu3 %v380_v1  ;;  %389 = vmatpush.bf16.msra.mxu0 %v380_v1  ;;  %v1596_v41 = vld [vmem:[%s2370_s1 + $0x10] sm:$0xf]  ;;  %v1626_v4 = vld [vmem:[%s2370_s1 + $0x1c] sm:$0xf]  ;;  %vm730_vm3 = vsmask.f32 6400 }
  0x12   : > { %s183_s7 = scalar_lea.vmem %s2369_s0, %s1670_s30  ;;  %v808_v47 = vsel %vm378_vm0, %v1596_v41, 0  ;;  %vm513_vm4 = vcmask 1046528   ;;  %vm1255_vm5 = vcmask 1044480   ;;  %vm1101_vm6 = vsmask.f32 5376  ;;  %s2384_s27 = smov (!%p186_p6, %s185_s27), 3 }
  0x13   : > { %s1829_s8 = scalar_lea.vmem %s183_s7, %s1520_s4  ;;  %vm884_vm7 = vcmask 1045504   ;;  %s1671_s28 = smul.u32 144, %s2384_s27 }
  0x14   : > { %570 = vmatpush.bf16.msrb.mxu2 %v561_v3  ;;  %464 = vmatpush.bf16.msrb.mxu1 %v455_v6  ;;  %v1832_v8 = vld [vmem:[%s1829_s8 + $0x8] sm:$0xff]  ;;  %v1835_v9 = vld [vmem:[%s1829_s8 + $0x10] sm:$0xff]  ;;  %v1838_v10 = vld [vmem:[%s1829_s8 + $0x20] sm:$0xff]  ;;  %v1179_v6 = vsel %vm378_vm0, %v1626_v4, 0 }
  0x15   : > { %663 = vmatpush.bf16.msrb.mxu3 %v654_v7  ;;  %v1841_v11 = vld [vmem:[%s1829_s8 + $0x28] sm:$0xff]  ;;  %v1844_v12 = vld [vmem:[%s1829_s8 + $0x38] sm:$0xff]  ;;  %v1847_v13 = vld [vmem:[%s1829_s8 + $0x40] sm:$0xff]  ;;  %v282_v14 = vshll.u32 %v1832_v8, 16  ;;  %v286_v15 = vshrl.u32 %v1832_v8, 16  ;;  %v1852_v16 = vshll.u32 %v1835_v9, 16  ;;  %817 = vmatpush.bf16.msrb.mxu0 %v808_v47  ;;  %s2301_s4 = scalar_lea.vmem %s2372_s3, %s1671_s28 }
  0x16   : > { %v1855_v17 = vshll.u32 %v1838_v10, 16  ;;  %v1858_v18 = vshrl.u32 %v1838_v10, 16  ;;  %v1861_v19 = vshll.u32 %v1841_v11, 16  ;;  %v1864_v20 = vshll.u32 %v1844_v12, 16  ;;  %v1877_v28 = vld [vmem:[%s1829_s8 + $0x48] sm:$0xff]   ;;  %v1887_v33 = vld [vmem:[%s1829_s8] sm:$0xff] }
  0x17   : > { %v1867_v21 = vshrl.u32 %v1844_v12, 16  ;;  %v284_v22 = vrot.slane %v282_v14, 1  ;;  %v292_v23 = vrot.slane %v1852_v16, 1  ;;  %v1872_v25 = vshll.u32 %v1847_v13, 16  ;;  %v1896_v38 = vld [vmem:[%s1829_s8 + $0x18] sm:$0xff]  ;;  %v1900_v39 = vld [vmem:[%s1829_s8 + $0x30] sm:$0xff] }
  0x18   : > { %v308_v24 = vrot.slane %v1855_v17, 1  ;;  %v316_v26 = vrot.slane %v1861_v19, 1  ;;  %v332_v27 = vrot.slane %v1864_v20, 1  ;;  %v1659_v36 = vunpack.c.l.b16 %v1877_v28  ;;  %v1616_v3 = vld [vmem:[%s2370_s1 + $0x18] sm:$0xf] }
  0x19   : > { %v288_v29 = vor.u32 %v286_v15, %v284_v22  ;;  %v340_v31 = vrot.slane %v1872_v25, 1  ;;  %v275_v42 = vshrl.u32 %v1887_v33, 16  ;;  %v277_v43 = vshll.u32 %v1887_v33, 16  ;;  %v1606_v7 = vld [vmem:[%s2370_s1 + $0x14] sm:$0xf] }
  0x1a   : > { %v312_v30 = vor.u32 %v1858_v18, %v308_v24  ;;  %v336_v32 = vor.u32 %v1867_v21, %v332_v27  ;;  %v1902_v40 = vpack.c.b16 %v1659_v36, %v1659_v36  ;;  %v1910_v44 = vshrl.u32 %v1835_v9, 16 }
  0x1b   : > { %v293_v34 = vsel %vm273_vm1, %v288_v29, %v292_v23  ;;  %v1913_v45 = vshll.u32 %v1896_v38, 16  ;;  %v279_v46 = vrot.slane %v277_v43, 1  ;;  %v1917_v48 = vshrl.u32 %v1841_v11, 16 }
  0x1c   : > { %v317_v35 = vsel %vm273_vm1, %v312_v30, %v316_v26  ;;  %1559 = vmatmul.msk.bf16.vlgmr.msra.gmra.mxu1 %vm350_vm2, %v293_v34  ;;  %v341_v37 = vsel %vm273_vm1, %v336_v32, %v340_v31  ;;  %v1920_v49 = vshll.u32 %v1900_v39, 16  ;;  %v1923_v50 = vshrl.u32 %v1847_v13, 16 }
  0x1d   : > { %1562 = vmatmul.msk.bf16.vlgmr.msra.gmra.mxu2 %vm350_vm2, %v317_v35  ;;  %1565 = vmatmul.msk.bf16.vlgmr.msra.gmra.mxu3 %vm350_vm2, %v341_v37  ;;  %v346_v51 = vshll.u32 %v1902_v40, 16  ;;  %v280_v52 = vor.u32 %v279_v46, %v275_v42  ;;  %v296_v53 = vor.u32 %v1910_v44, %v292_v23  ;;  %v300_v54 = vrot.slane %v1913_v45, 1  ;;  %v1636_v23 = vld [vmem:[%s2370_s1 + $0x20] sm:$0xf] }
  0x1e   : > { %v320_v56 = vor.u32 %v1917_v48, %v316_v26  ;;  %v324_v57 = vrot.slane %v1920_v49, 1  ;;  %v344_v58 = vor.u32 %v1923_v50, %v340_v31  ;;  %v731_v63 = vrot.slane %v286_v15, 1  ;;  %1188 = vmatpush.bf16.msra.mxu3 %v1179_v6 }
  0x1f   : > { %v285_v55 = vsel %vm273_vm1, %v280_v52, %v284_v22  ;;  %v348_v59 = vrot.slane %v346_v51, 1  ;;  %v301_v60 = vsel %vm273_vm1, %v296_v53, %v300_v54  ;;  %v732_v0 = vrot.slane %v282_v14, 2 }
  0x20   : > { %1558 = vmatmul.msk.bf16.vlgmr.msra.gmra.mxu0 %vm350_vm2, %v285_v55  ;;  %v325_v61 = vsel %vm273_vm1, %v320_v56, %v324_v57  ;;  %v734_v1 = vrot.slane %v1910_v44, 1  ;;  %v735_v2 = vrot.slane %v1852_v16, 2  ;;  %v1025_v5 = vsel %vm378_vm0, %v1616_v3, 0 }
  0x21   : > { %v349_v62 = vsel %vm273_vm1, %v344_v58, %v348_v59  ;;  %1034 = vmatpush.bf16.msra.mxu2 %v1025_v5  ;;  %v733_v14 = vor.u32 %v732_v0, %v731_v63  ;;  %v932_v22 = vsel %vm378_vm0, %v1606_v7, 0  ;;  %v1303_v26 = vsel %vm378_vm0, %v1636_v23, 0 }
  0x22   : > { %v736_v15 = vor.u32 %v735_v2, %v734_v1  ;;  %941 = vmatpush.bf16.msra.mxu1 %v932_v22  ;;  %1312 = vmatpush.bf16.msra.mxu0 %v1303_v26  ;;  %v1958_v29 = vshrl.u32 %v1896_v38, 16  ;;  %v1961_v30 = vshrl.u32 %v1900_v39, 16  ;;  %v515_v35 = vrot.slane %v1832_v8, 1 }
  0x23   : > { %v517_v36 = vrot.slane %v1835_v9, 1  ;;  %v739_v46 = vrot.slane %v1913_v45, 2  ;;  %v743_v55 = vrot.slane %v1855_v17, 2  ;;  %v521_v58 = vrot.slane %v1838_v10, 1 }
  0x24   : > { %v737_v31 = vsel %vm730_vm3, %v733_v14, %v736_v15  ;;  %v304_v32 = vor.u32 %v1958_v29, %v300_v54  ;;  %v328_v34 = vor.u32 %v1961_v30, %v324_v57  ;;  %v738_v43 = vrot.slane %v1958_v29, 1 }
  0x25   : > { %v518_v42 = vsel %vm513_vm4, %v515_v35, %v517_v36  ;;  %v742_v54 = vrot.slane %v1858_v18, 1  ;;  %v523_v63 = vrot.slane %v1841_v11, 1  ;;  %v750_v1 = vrot.slane %v1961_v30, 1 }
  0x26   : > { %v309_v37 = vsel %vm273_vm1, %v304_v32, %v308_v24  ;;  %v333_v41 = vsel %vm273_vm1, %v328_v34, %v332_v27  ;;  %v740_v47 = vor.u32 %v739_v46, %v738_v43  ;;  %v514_v24 = vrot.slane %v1887_v33, 1 }
  0x27   : > { %v519_v27 = vrot.slane %v1896_v38, 1  ;;  %v744_v56 = vor.u32 %v743_v55, %v742_v54  ;;  %v524_v0 = vsel %vm513_vm4, %v521_v58, %v523_v63  ;;  %v751_v2 = vrot.slane %v1920_v49, 2 }
  0x28   : > { %v741_v51 = vsel %vm730_vm3, %v736_v15, %v740_v47  ;;  %v516_v52 = vsel %vm513_vm4, %v514_v24, %v515_v35  ;;  %v525_v5 = vrot.slane %v1900_v39, 1  ;;  %v754_v7 = vrot.slane %v1867_v21, 1  ;;  %v2053_v24 = vld [vmem:[%s1829_s8 + $0x50] sm:$0xff]  }
  0x29   : > { %v520_v53 = vsel %vm513_vm4, %v517_v36, %v519_v27  ;;  %v745_v57 = vsel %vm730_vm3, %v740_v47, %v744_v56  ;;  %v522_v59 = vsel %vm513_vm4, %v519_v27, %v521_v58  ;;  %v752_v3 = vor.u32 %v751_v2, %v750_v1 }
  0x2a   : > { %v526_v6 = vsel %vm513_vm4, %v523_v63, %v525_v5  ;;  %v755_v14 = vrot.slane %v1864_v20, 2  ;;  %v527_v23 = vrot.slane %v1844_v12, 1  ;;  %v759_v32 = vrot.slane %v1872_v25, 2 }
  0x2b   : > { %v2036_v36 = vrot.slane %v1847_v13, 1  ;;  %v1663_v54 = vunpack.c.l.b16 %v2053_v24  ;;  %v643_v58 = vrot.slane %v1877_v28, 1 }
  0x2c   : > { %1560 = vmatmul.msk.bf16.gmra.mxu1 %vm350_vm2, %v301_v60  ;;  %v746_v60 = vrot.slane %v1917_v48, 1  ;;  %v756_v15 = vor.u32 %v755_v14, %v754_v7  ;;  %v528_v26 = vsel %vm513_vm4, %v525_v5, %v527_v23 }
  0x2d   : > { %1563 = vmatmul.msk.bf16.gmra.mxu2 %vm350_vm2, %v325_v61  ;;  %1566 = vmatmul.msk.bf16.gmra.mxu3 %vm350_vm2, %v349_v62  ;;  %v747_v61 = vrot.slane %v1861_v19, 2  ;;  %v530_v43 = vsel %vm513_vm4, %v527_v23, %v2036_v36  ;;  %v644_v63 = vsel %vm513_vm4, %v2036_v36, %v643_v58 }
  0x2e   : > { %v757_v22 = vsel %vm730_vm3, %v752_v3, %v756_v15 }
  0x30   : > { %1597 = vmatmul.msk.bf16.vlgmr.msrb.gmra.mxu0 %vm350_vm2, %v737_v31  ;;  %v758_v31 = vrot.slane %v1923_v50, 1 }
  0x32   : > { %v760_v34 = vor.u32 %v759_v32, %v758_v31 }
  0x34   : > { %v761_v35 = vsel %vm730_vm3, %v756_v15, %v760_v34 }
  0x3c   : > { %1561 = vmatmul.msk.bf16.gmra.mxu1 %vm350_vm2, %v309_v37  ;;  %v763_v37 = vshrl.u32 %v1877_v28, 16 }
  0x3d   : > { %1564 = vmatmul.msk.bf16.gmra.mxu2 %vm350_vm2, %v333_v41  ;;  %1587 = vmatmul.msk.bf16.vlgmr.msrb.gmra.mxu3 %vm350_vm2, %v518_v42  ;;  %v766_v41 = vshll.u32 %v1877_v28, 16 }
  0x3e   : > { %v765_v46 = vrot.slane %v763_v37, 1 }
  0x3f   : > { %v768_v47 = vrot.slane %v766_v41, 2 }
  0x40   : > { %1598 = vmatmul.msk.bf16.gmra.mxu0 %vm350_vm2, %v741_v51 }
  0x41   : > { %v769_v51 = vor.u32 %v768_v47, %v765_v46 }
  0x4c   : > { %1567 = vmatmul.msk.bf16.vlgmr.msrb.gmra.mxu1 %vm350_vm2, %v1887_v33  ;;  %v748_v33 = vor.u32 %v747_v61, %v746_v60 }
  0x4d   : > { %1577 = vmatmul.msk.bf16.vlgmr.msrb.gmra.mxu2 %vm350_vm2, %v516_v52  ;;  %1588 = vmatmul.msk.bf16.gmra.mxu3 %vm350_vm2, %v520_v53 }
  0x4e   : > { %v749_v62 = vsel %vm730_vm3, %v744_v56, %v748_v33  ;;  %v753_v4 = vsel %vm730_vm3, %v748_v33, %v752_v3  ;;  %v770_v56 = vsel %vm730_vm3, %v760_v34, %v769_v51  ;;  %v1256_v34 = vrot.slane %v1835_v9, 3 }
  0x50   : > { %1599 = vmatmul.msk.bf16.gmra.mxu0 %vm350_vm2, %v745_v57  ;;  %v2064_v57 = vpack.c.b16 %v1663_v54, %v1663_v54  ;;  %v1102_v54 = vrot.slane %v1910_v44, 2 }
  0x52   : > { %v772_v60 = vshrl.u32 %v2064_v57, 16  ;;  %v775_v61 = vshll.u32 %v2064_v57, 16  ;;  %v645_v15 = vrot.slane %v2064_v57, 1 }
  0x54   : > { %v774_v1 = vrot.slane %v772_v60, 1  ;;  %v777_v2 = vrot.slane %v775_v61, 2  ;;  %v646_v31 = vsel %vm513_vm4, %v643_v58, %v645_v15  ;;  %v1105_v58 = vrot.slane %v1958_v29, 2 }
  0x56   : > { %v778_v3 = vor.u32 %v777_v2, %v774_v1 }
  0x58   : > { %v779_v14 = vsel %vm730_vm3, %v769_v51, %v778_v3 }
  0x5c   : > { %1568 = vmatmul.msk.bf16.gmra.mxu1 %vm350_vm2, %v1832_v8 }
  0x5d   : > { %1578 = vmatmul.msk.bf16.gmra.mxu2 %vm350_vm2, %v518_v42  ;;  %1589 = vmatmul.msk.bf16.gmra.mxu3 %vm350_vm2, %v522_v59 }
  0x60   : > { %1600 = vmatmul.msk.bf16.gmra.mxu0 %vm350_vm2, %v749_v62 }
  0x6c   : > { %1569 = vmatmul.msk.bf16.gmra.mxu1 %vm350_vm2, %v1835_v9 }
  0x6d   : > { %1579 = vmatmul.msk.bf16.gmra.mxu2 %vm350_vm2, %v520_v53  ;;  %1590 = vmatmul.msk.bf16.gmra.mxu3 %vm350_vm2, %v524_v0 }
  0x70   : > { %1601 = vmatmul.msk.bf16.gmra.mxu0 %vm350_vm2, %v753_v4 }
  0x7c   : > { %1570 = vmatmul.msk.bf16.gmra.mxu1 %vm350_vm2, %v1896_v38 }
  0x7d   : > { %1580 = vmatmul.msk.bf16.gmra.mxu2 %vm350_vm2, %v522_v59  ;;  %1591 = vmatmul.msk.bf16.gmra.mxu3 %vm350_vm2, %v526_v6 }
  0x80   : > { %1602 = vmatmul.msk.bf16.gmra.mxu0 %vm350_vm2, %v757_v22 }
  0x8c   : > { %1571 = vmatmul.msk.bf16.gmra.mxu1 %vm350_vm2, %v1838_v10 }
  0x8d   : > { %1581 = vmatmul.msk.bf16.gmra.mxu2 %vm350_vm2, %v524_v0  ;;  %1592 = vmatmul.msk.bf16.gmra.mxu3 %vm350_vm2, %v528_v26 }
  0x90   : > { %1603 = vmatmul.msk.bf16.gmra.mxu0 %vm350_vm2, %v761_v35  ;;  %v1257_v35 = vrot.slane %v1896_v38, 3 }
  0x92   : > { %v1258_v61 = vsel %vm1255_vm5, %v1256_v34, %v1257_v35 }
  0x99   : > { %v2040_v42 = vpop.f32.mrf.mxu1 }
  0x9c   : > { %1572 = vmatmul.msk.bf16.gmra.mxu1 %vm350_vm2, %v1841_v11 }
  0x9d   : > { %1582 = vmatmul.msk.bf16.gmra.mxu2 %vm350_vm2, %v526_v6  ;;  %1593 = vmatmul.msk.bf16.gmra.mxu3 %vm350_vm2, %v530_v43  ;;  %v391_v55 = vpop.f32.mrf.mxu0 }
  0xa0   : > { %v2055_v27 = vpop.f32.mrf.mxu2  ;;  %v2057_v52 = vpop.f32.mrf.mxu3  ;;  %1604 = vmatmul.msk.bf16.gmra.mxu0 %vm350_vm2, %v770_v56  ;;  %v1103_v56 = vrot.slane %v1852_v16, 3 }
  0xa1   : > { %v2059_v53 = vpop.f32.mrf.mxu1 }
  0xa2   : > { %v1104_v1 = vor.u32 %v1103_v56, %v1102_v54 }
  0xa5   : > { %v393_v0 = vpop.f32.mrf.mxu0 }
  0xa8   : > { %v2067_v59 = vpop.f32.mrf.mxu2  ;;  %v2071_v33 = vpop.f32.mrf.mxu3 }
  0xa9   : > { %v2073_v62 = vpop.f32.mrf.mxu1 }
  0xac   : > { %1573 = vmatmul.msk.bf16.gmra.mxu1 %vm350_vm2, %v1900_v39 }
  0xad   : > { %1583 = vmatmul.msk.bf16.gmra.mxu2 %vm350_vm2, %v528_v26  ;;  %1594 = vmatmul.msk.bf16.gmra.mxu3 %vm350_vm2, %v644_v63  ;;  %v819_v7 = vpop.f32.mrf.mxu0  ;;  %v531_v63 = vrot.slane %v1902_v40, 1  ;;  %v1259_v40 = vrot.slane %v1838_v10, 3 }
  0xaf   : > { %v532_v16 = vsel %vm513_vm4, %v2036_v36, %v531_v63  ;;  %v1260_v63 = vsel %vm1255_vm5, %v1257_v35, %v1259_v40 }
  0xb0   : > { %v2081_v4 = vpop.f32.mrf.mxu2  ;;  %v2083_v5 = vpop.f32.mrf.mxu3  ;;  %1605 = vmatmul.msk.bf16.gmra.mxu0 %vm350_vm2, %v779_v14 }
  0xb1   : > { %v2085_v6 = vpop.f32.mrf.mxu1 }
  0xb5   : > { %v821_v32 = vpop.f32.mrf.mxu0 }
  0xb8   : > { %v2090_v22 = vpop.f32.mrf.mxu2  ;;  %v2092_v23 = vpop.f32.mrf.mxu3 }
  0xb9   : > { %v2094_v26 = vpop.f32.mrf.mxu1 }
  0xbc   : > { %1574 = vmatmul.msk.bf16.gmra.mxu1 %vm350_vm2, %v1844_v12 }
  0xbd   : > { %1584 = vmatmul.msk.bf16.gmra.mxu2 %vm350_vm2, %v530_v43  ;;  %1595 = vmatmul.msk.bf16.gmra.mxu3 %vm350_vm2, %v646_v31  ;;  %v1106_v43 = vrot.slane %v1913_v45, 3  ;;  %v824_v60 = vpop.f32.mrf.mxu0 }
  0xbf   : > { %v1107_v2 = vor.u32 %v1106_v43, %v1105_v58  ;;  %v1109_v58 = vrot.slane %v1858_v18, 2  ;;  %v1110_v43 = vrot.slane %v1855_v17, 3 }
  0xc0   : > { %v2103_v46 = vpop.f32.mrf.mxu2  ;;  %v665_v47 = vpop.f32.mrf.mxu3  ;;  %1637 = vmatmul.msk.bf16.vlgmr.msra.gmra.mxu0 %vm350_vm2, %v1258_v61 }
  0xc1   : > { %v2105_v51 = vpop.f32.mrf.mxu1  ;;  %v1108_v45 = vsel %vm1101_vm6, %v1104_v1, %v1107_v2  ;;  %v1111_v18 = vor.u32 %v1110_v43, %v1109_v58 }
  0xc5   : > { %v826_v15 = vpop.f32.mrf.mxu0 }
  0xc8   : > { %v2114_v3 = vpop.f32.mrf.mxu2  ;;  %v667_v14 = vpop.f32.mrf.mxu3 }
  0xc9   : > { %v466_v44 = vpop.f32.mrf.mxu1 }
  0xca   : > { %v467_v29 = vadd.f32 %v466_v44, %v391_v55  ;;  %v885_v44 = vrot.slane %v1832_v8, 2  ;;  %v1112_v8 = vsel %vm1101_vm6, %v1107_v2, %v1111_v18 }
  0xcc   : > { %1575 = vmatmul.msk.bf16.gmra.mxu1 %vm350_vm2, %v1847_v13 }
  0xcd   : > { %1585 = vmatmul.msk.bf16.gmra.mxu2 %vm350_vm2, %v532_v16  ;;  %1627 = vmatmul.msk.bf16.vlgmr.msra.gmra.mxu3 %vm350_vm2, %v1108_v45  ;;  %v2126_v61 = vpop.f32.mrf.mxu0  ;;  %v886_v16 = vrot.slane %v1835_v9, 2 }
  0xd0   : > { %v572_v31 = vpop.f32.mrf.mxu2  ;;  %v670_v54 = vpop.f32.mrf.mxu3  ;;  %1638 = vmatmul.msk.bf16.gmra.mxu0 %vm350_vm2, %v1260_v63  ;;  %v1114_v63 = vrot.slane %v1861_v19, 3 }
  0xd1   : > { %v617_v34 = vadd.f32 %v572_v31, %v467_v29  ;;  %v468_v56 = vpop.f32.mrf.mxu1  ;;  %v888_v29 = vrot.slane %v1896_v38, 2  ;;  %v887_v31 = vsel %vm884_vm7, %v885_v44, %v886_v16 }
  0xd2   : > { %v469_v55 = vadd.f32 %v468_v56, %v393_v0  ;;  %v1261_v56 = vrot.slane %v1841_v11, 3 }
  0xd3   : > { %v710_v36 = vadd.f32 %v665_v47, %v617_v34  ;;  %v889_v35 = vsel %vm884_vm7, %v886_v16, %v888_v29 }
  0xd4   : > { %v1262_v16 = vsel %vm1255_vm5, %v1259_v40, %v1261_v56 }
  0xd5   : > { %v2129_v1 = vadd.f32 %v819_v7, %v710_v36  ;;  %v831_v9 = vpop.f32.mrf.mxu0 }
  0xd8   : > { %v574_v47 = vpop.f32.mrf.mxu2  ;;  %v672_v45 = vpop.f32.mrf.mxu3 }
  0xd9   : > { %v618_v0 = vadd.f32 %v574_v47, %v469_v55  ;;  %v471_v17 = vpop.f32.mrf.mxu1  ;;  %v890_v47 = vrot.slane %v1838_v10, 2 }
  0xda   : > { %v472_v34 = vadd.f32 %v471_v17, %v2040_v42 }
  0xdb   : > { %v711_v7 = vadd.f32 %v667_v14, %v618_v0  ;;  %v1113_v14 = vrot.slane %v1917_v48, 2  ;;  %v891_v48 = vsel %vm884_vm7, %v888_v29, %v890_v47 }
  0xdc   : > { %1607 = vmatmul.msk.bf16.vlgmr.msra.gmra.mxu1 %vm350_vm2, %v887_v31 }
  0xdd   : > { %1617 = vmatmul.msk.bf16.vlgmr.msra.gmra.mxu2 %vm350_vm2, %v889_v35  ;;  %v2141_v38 = vadd.f32 %v821_v32, %v711_v7  ;;  %1628 = vmatmul.msk.bf16.gmra.mxu3 %vm350_vm2, %v1112_v8  ;;  %v834_v44 = vpop.f32.mrf.mxu0  ;;  %v1115_v0 = vor.u32 %v1114_v63, %v1113_v14 }
  0xdf   : > { %v1116_v19 = vsel %vm1101_vm6, %v1111_v18, %v1115_v0 }
  0xe0   : > { %v577_v58 = vpop.f32.mrf.mxu2  ;;  %v675_v55 = vpop.f32.mrf.mxu3  ;;  %1639 = vmatmul.msk.bf16.gmra.mxu0 %vm350_vm2, %v1262_v16 }
  0xe1   : > { %v619_v36 = vadd.f32 %v577_v58, %v472_v34  ;;  %v473_v43 = vpop.f32.mrf.mxu1 }
  0xe2   : > { %v474_v2 = vadd.f32 %v473_v43, %v2059_v53  ;;  %v1118_v43 = vrot.slane %v1920_v49, 3 }
  0xe3   : > { %v712_v42 = vadd.f32 %v670_v54, %v619_v36 }
  0xe5   : > { %v2149_v32 = vadd.f32 %v824_v60, %v712_v42  ;;  %v836_v8 = vpop.f32.mrf.mxu0  ;;  %v1263_v60 = vrot.slane %v1900_v39, 3  ;;  %v892_v42 = vrot.slane %v1841_v11, 2 }
  0xe7   : > { %v1264_v14 = vsel %vm1255_vm5, %v1261_v56, %v1263_v60 }
  0xe8   : > { %v579_v17 = vpop.f32.mrf.mxu2  ;;  %v677_v7 = vpop.f32.mrf.mxu3 }
  0xe9   : > { %v620_v31 = vadd.f32 %v579_v17, %v474_v2  ;;  %v476_v34 = vpop.f32.mrf.mxu1 }
  0xea   : > { %v477_v53 = vadd.f32 %v476_v34, %v2073_v62 }
  0xeb   : > { %v713_v54 = vadd.f32 %v672_v45, %v620_v31  ;;  %v1117_v45 = vrot.slane %v1961_v30, 2 }
  0xec   : > { %1608 = vmatmul.msk.bf16.gmra.mxu1 %vm350_vm2, %v889_v35 }
  0xed   : > { %1618 = vmatmul.msk.bf16.gmra.mxu2 %vm350_vm2, %v891_v48  ;;  %v2158_v10 = vadd.f32 %v826_v15, %v713_v54  ;;  %1629 = vmatmul.msk.bf16.gmra.mxu3 %vm350_vm2, %v1116_v19  ;;  %v839_v35 = vpop.f32.mrf.mxu0  ;;  %v1119_v2 = vor.u32 %v1118_v43, %v1117_v45  ;;  %v1122_v19 = vrot.slane %v1864_v20, 3 }
  0xef   : > { %v1120_v31 = vsel %vm1101_vm6, %v1115_v0, %v1119_v2 }
  0xf0   : > { %v582_v40 = vpop.f32.mrf.mxu2  ;;  %v680_v36 = vpop.f32.mrf.mxu3  ;;  %1640 = vmatmul.msk.bf16.gmra.mxu0 %vm350_vm2, %v1264_v14 }
  0xf1   : > { %v621_v58 = vadd.f32 %v582_v40, %v477_v53  ;;  %v478_v29 = vpop.f32.mrf.mxu1 }
  0xf2   : > { %v479_v18 = vadd.f32 %v478_v29, %v2085_v6 }
  0xf3   : > { %v714_v62 = vadd.f32 %v675_v55, %v621_v58  ;;  %v893_v55 = vsel %vm884_vm7, %v890_v47, %v892_v42  ;;  %v894_v58 = vrot.slane %v1900_v39, 2 }
  0xf5   : > { %v2167_v15 = vadd.f32 %v2126_v61, %v714_v62  ;;  %v841_v56 = vpop.f32.mrf.mxu0  ;;  %v1265_v61 = vrot.slane %v1844_v12, 3 }
  0xf7   : > { %v1266_v40 = vsel %vm1255_vm5, %v1263_v60, %v1265_v61  ;;  %v1267_v60 = vrot.slane %v1847_v13, 3 }
  0xf8   : > { %v584_v63 = vpop.f32.mrf.mxu2  ;;  %v682_v17 = vpop.f32.mrf.mxu3 }
  0xf9   : > { %v622_v16 = vadd.f32 %v584_v63, %v479_v18  ;;  %v481_v30 = vpop.f32.mrf.mxu1 }
  0xfa   : > { %v482_v49 = vadd.f32 %v481_v30, %v2094_v26  ;;  %v1126_v30 = vrot.slane %v1872_v25, 3 }
  0xfb   : > { %v715_v6 = vadd.f32 %v677_v7, %v622_v16  ;;  %v1121_v7 = vrot.slane %v1867_v21, 2  ;;  %v895_v21 = vsel %vm884_vm7, %v892_v42, %v894_v58 }
  0xfc   : > { %1609 = vmatmul.msk.bf16.gmra.mxu1 %vm350_vm2, %v891_v48 }
  0xfd   : > { %1619 = vmatmul.msk.bf16.gmra.mxu2 %vm350_vm2, %v893_v55  ;;  %v2176_v11 = vadd.f32 %v831_v9, %v715_v6  ;;  %1630 = vmatmul.msk.bf16.gmra.mxu3 %vm350_vm2, %v1120_v31  ;;  %v844_v48 = vpop.f32.mrf.mxu0  ;;  %v1123_v29 = vor.u32 %v1122_v19, %v1121_v7  ;;  %v1268_v6 = vsel %vm1255_vm5, %v1265_v61, %v1267_v60 }
 0x100   : > { %v587_v34 = vpop.f32.mrf.mxu2  ;;  %v685_v53 = vpop.f32.mrf.mxu3  ;;  %1641 = vmatmul.msk.bf16.gmra.mxu0 %vm350_vm2, %v1266_v40 }
 0x101   : > { %v623_v54 = vadd.f32 %v587_v34, %v482_v49  ;;  %v483_v47 = vpop.f32.mrf.mxu1  ;;  %v896_v49 = vrot.slane %v1844_v12, 2 }
 0x102   : > { %v484_v0 = vadd.f32 %v483_v47, %v2105_v51  ;;  %v1124_v51 = vsel %vm1101_vm6, %v1119_v2, %v1123_v29  ;;  %v1125_v2 = vrot.slane %v1923_v50, 2 }
 0x103   : > { %v716_v26 = vadd.f32 %v680_v36, %v623_v54  ;;  %v897_v50 = vsel %vm884_vm7, %v894_v58, %v896_v49 }
 0x104   : > { %v1127_v31 = vor.u32 %v1126_v30, %v1125_v2 }
 0x105   : > { %v2184_v9 = vadd.f32 %v834_v44, %v716_v26  ;;  %v846_v20 = vpop.f32.mrf.mxu0 }
 0x106   : > { %v1128_v25 = vsel %vm1101_vm6, %v1123_v29, %v1127_v31  ;;  %v1129_v29 = vrot.slane %v763_v37, 2 }
 0x108   : > { %v589_v45 = vpop.f32.mrf.mxu2  ;;  %v687_v18 = vpop.f32.mrf.mxu3 }
 0x109   : > { %v624_v62 = vadd.f32 %v589_v45, %v484_v0  ;;  %v486_v43 = vpop.f32.mrf.mxu1  ;;  %v1130_v45 = vrot.slane %v766_v41, 3 }
 0x10a   : > { %v487_v39 = vadd.f32 %v486_v43, %v2055_v27 }
 0x10b   : > { %v717_v36 = vadd.f32 %v682_v17, %v624_v62 }
 0x10c   : > { %1610 = vmatmul.msk.bf16.gmra.mxu1 %vm350_vm2, %v893_v55 }
 0x10d   : > { %1620 = vmatmul.msk.bf16.gmra.mxu2 %vm350_vm2, %v895_v21  ;;  %v2192_v44 = vadd.f32 %v836_v8, %v717_v36  ;;  %1631 = vmatmul.msk.bf16.gmra.mxu3 %vm350_vm2, %v1124_v51  ;;  %v849_v55 = vpop.f32.mrf.mxu0 }
 0x110   : > { %v592_v14 = vpop.f32.mrf.mxu2  ;;  %v690_v16 = vpop.f32.mrf.mxu3  ;;  %1642 = vmatmul.msk.bf16.gmra.mxu0 %vm350_vm2, %v1268_v6 }
 0x111   : > { %v625_v63 = vadd.f32 %v592_v14, %v487_v39  ;;  %v488_v42 = vpop.f32.mrf.mxu1 }
 0x112   : > { %v489_v27 = vadd.f32 %v488_v42, %v2067_v59  ;;  %v1271_v42 = vrot.slane %v2053_v24, 3 }
 0x113   : > { %v718_v17 = vadd.f32 %v685_v53, %v625_v63 }
 0x115   : > { %v2200_v8 = vadd.f32 %v839_v35, %v718_v17  ;;  %v2207_v26 = vpop.f32.mrf.mxu0  ;;  %v1269_v35 = vrot.slane %v1877_v28, 3 }
 0x118   : > { %v594_v34 = vpop.f32.mrf.mxu2  ;;  %v692_v47 = vpop.f32.mrf.mxu3 }
 0x119   : > { %v626_v54 = vadd.f32 %v594_v34, %v489_v27  ;;  %v491_v53 = vpop.f32.mrf.mxu1 }
 0x11a   : > { %v492_v59 = vadd.f32 %v491_v53, %v2081_v4  ;;  %v898_v4 = vrot.slane %v1847_v13, 2 }
 0x11b   : > { %v719_v7 = vadd.f32 %v687_v18, %v626_v54  ;;  %v221_v54 = vld [vmem:[%s1829_s8 + $0x58] sm:$0xf] }
 0x11c   : > { %1611 = vmatmul.msk.bf16.gmra.mxu1 %vm350_vm2, %v895_v21  ;;  %v1131_v21 = vor.u32 %v1130_v45, %v1129_v29  ;;  %v899_v14 = vsel %vm884_vm7, %v896_v49, %v898_v4 }
 0x11d   : > { %1621 = vmatmul.msk.bf16.gmra.mxu2 %vm350_vm2, %v897_v50  ;;  %v2211_v12 = vadd.f32 %v841_v56, %v719_v7  ;;  %1632 = vmatmul.msk.bf16.gmra.mxu3 %vm350_vm2, %v1128_v25  ;;  %v2220_v62 = vpop.f32.mrf.mxu0  ;;  %v1270_v56 = vsel %vm1255_vm5, %v1267_v60, %v1269_v35  ;;  %v1137_v60 = vshll.u32 %v2053_v24, 16  ;;  %v1011_v7 = vunpack.c.l.b16 %v221_v54 }
 0x11e   : > { %v1132_v63 = vsel %vm1101_vm6, %v1127_v31, %v1131_v21 }
 0x11f   : > { %v1139_v31 = vrot.slane %v1137_v60, 3 }
 0x120   : > { %v597_v61 = vpop.f32.mrf.mxu2  ;;  %v695_v19 = vpop.f32.mrf.mxu3  ;;  %1643 = vmatmul.msk.bf16.gmra.mxu0 %vm350_vm2, %v1270_v56 }
 0x121   : > { %v627_v0 = vadd.f32 %v597_v61, %v492_v59  ;;  %v493_v40 = vpop.f32.mrf.mxu1 }
 0x122   : > { %v494_v43 = vadd.f32 %v493_v40, %v2090_v22 }
 0x123   : > { %v720_v58 = vadd.f32 %v690_v16, %v627_v0 }
 0x125   : > { %v2223_v18 = vadd.f32 %v844_v48, %v720_v58  ;;  %v2230_v16 = vpop.f32.mrf.mxu0  ;;  %v1134_v48 = vshrl.u32 %v2053_v24, 16  ;;  %v1013_v58 = vpack.c.b16 %v1011_v7, %v1011_v7 }
 0x127   : > { %v1136_v27 = vrot.slane %v1134_v48, 2  ;;  %v1143_v29 = vshrl.u32 %v1013_v58, 16  ;;  %v1146_v45 = vshll.u32 %v1013_v58, 16  ;;  %v1273_v56 = vrot.slane %v1013_v58, 3 }
 0x128   : > { %v599_v36 = vpop.f32.mrf.mxu2  ;;  %v697_v39 = vpop.f32.mrf.mxu3  ;;  %v1016_v7 = vrot.slane %v1013_v58, 2 }
 0x129   : > { %v628_v51 = vadd.f32 %v599_v36, %v494_v43  ;;  %v496_v37 = vpop.f32.mrf.mxu1 }
 0x12a   : > { %v497_v22 = vadd.f32 %v496_v37, %v2103_v46  ;;  %v2246_v46 = vrot.slane %v1877_v28, 2  ;;  %v1148_v37 = vrot.slane %v1146_v45, 3 }
 0x12b   : > { %v721_v41 = vadd.f32 %v692_v47, %v628_v51 }
 0x12c   : > { %1612 = vmatmul.msk.bf16.gmra.mxu1 %vm350_vm2, %v897_v50  ;;  %v1140_v50 = vor.u32 %v1139_v31, %v1136_v27 }
 0x12d   : > { %1622 = vmatmul.msk.bf16.gmra.mxu2 %vm350_vm2, %v899_v14  ;;  %v2234_v13 = vadd.f32 %v846_v20, %v721_v41  ;;  %1633 = vmatmul.msk.bf16.gmra.mxu3 %vm350_vm2, %v1132_v63  ;;  %v859_v34 = vpop.f32.mrf.mxu0  ;;  %v1272_v20 = vsel %vm1255_vm5, %v1269_v35, %v1271_v42  ;;  %v1274_v41 = vsel %vm1255_vm5, %v1271_v42, %v1273_v56  ;;  %v1014_v63 = vrot.slane %v2053_v24, 2 }
 0x130   : > { %v602_v17 = vpop.f32.mrf.mxu2  ;;  %v700_v30 = vpop.f32.mrf.mxu3  ;;  %1644 = vmatmul.msk.bf16.gmra.mxu0 %vm350_vm2, %v1272_v20 }
 0x131   : > { %v629_v2 = vadd.f32 %v602_v17, %v497_v22  ;;  %v498_v6 = vpop.f32.mrf.mxu1 }
 0x132   : > { %v499_v53 = vadd.f32 %v498_v6, %v2114_v3 }
 0x133   : > { %v722_v49 = vadd.f32 %v695_v19, %v629_v2  ;;  %v901_v19 = vsel %vm884_vm7, %v898_v4, %v2246_v46 }
 0x135   : > { %v2243_v47 = vadd.f32 %v849_v55, %v722_v49  ;;  %v1141_v55 = vsel %vm1101_vm6, %v1131_v21, %v1140_v50  ;;  %v861_v40 = vpop.f32.mrf.mxu0 }
 0x138   : > { %v604_v25 = vpop.f32.mrf.mxu2  ;;  %v702_v61 = vpop.f32.mrf.mxu3 }
 0x139   : > { %v630_v59 = vadd.f32 %v604_v25, %v499_v53  ;;  %v501_v0 = vpop.f32.mrf.mxu1 }
 0x13a   : > { %v502_v3 = vadd.f32 %v501_v0, %v2057_v52 }
 0x13b   : > { %v723_v35 = vadd.f32 %v697_v39, %v630_v59  ;;  %v1145_v39 = vrot.slane %v1143_v29, 2 }
 0x13c   : > { %1613 = vmatmul.msk.bf16.gmra.mxu1 %vm350_vm2, %v899_v14 }
 0x13d   : > { %1623 = vmatmul.msk.bf16.gmra.mxu2 %vm350_vm2, %v901_v19  ;;  %v2256_v28 = vadd.f32 %v2207_v26, %v723_v35  ;;  %1634 = vmatmul.msk.bf16.gmra.mxu3 %vm350_vm2, %v1141_v55  ;;  %v1314_v14 = vpop.f32.mrf.mxu0  ;;  %v1149_v22 = vor.u32 %v1148_v37, %v1145_v39  ;;  %v1017_v35 = vsel %vm884_vm7, %v1014_v63, %v1016_v7 }
 0x13f   : > { %v1150_v42 = vsel %vm1101_vm6, %v1140_v50, %v1149_v22  ;;  %v902_v50 = vrot.slane %v2064_v57, 2 }
 0x140   : > { %v607_v4 = vpop.f32.mrf.mxu2  ;;  %v705_v36 = vpop.f32.mrf.mxu3  ;;  %1645 = vmatmul.msk.bf16.gmra.mxu0 %vm350_vm2, %v1274_v41 }
 0x141   : > { %v631_v43 = vadd.f32 %v607_v4, %v502_v3  ;;  %v503_v21 = vpop.f32.mrf.mxu1 }
 0x142   : > { %v504_v52 = vadd.f32 %v503_v21, %v2071_v33 }
 0x143   : > { %v724_v51 = vadd.f32 %v700_v30, %v631_v43  ;;  %v1015_v30 = vsel %vm884_vm7, %v2246_v46, %v1014_v63 }
 0x145   : > { %v2262_v26 = vadd.f32 %v2220_v62, %v724_v51  ;;  %v1316_v62 = vpop.f32.mrf.mxu0 }
 0x148   : > { %v609_v48 = vpop.f32.mrf.mxu2  ;;  %v707_v17 = vpop.f32.mrf.mxu3 }
 0x149   : > { %v632_v60 = vadd.f32 %v609_v48, %v504_v52  ;;  %v506_v2 = vpop.f32.mrf.mxu1 }
 0x14a   : > { %v507_v33 = vadd.f32 %v506_v2, %v2083_v5  ;;  %v903_v5 = vsel %vm884_vm7, %v2246_v46, %v902_v50  ;;  %v2294_v46 = vld [vmem:[%s2371_s2] ss:$0 sm:$0xff] }
 0x14b   : > { %v725_v6 = vadd.f32 %v702_v61, %v632_v60 }
 0x14c   : > { %1614 = vmatmul.msk.bf16.gmra.mxu1 %vm350_vm2, %v901_v19 }
 0x14d   : > { %1624 = vmatmul.msk.bf16.gmra.mxu2 %vm350_vm2, %v1015_v30  ;;  %v2273_v24 = vadd.f32 %v2230_v16, %v725_v6  ;;  %1635 = vmatmul.msk.bf16.gmra.mxu3 %vm350_vm2, %v1150_v42  ;;  %v1319_v25 = vpop.f32.mrf.mxu0 }
 0x150   : > { %v612_v49 = vpop.f32.mrf.mxu2  ;;  %v1190_v31 = vpop.f32.mrf.mxu3 }
 0x151   : > { %v633_v27 = vadd.f32 %v612_v49, %v507_v33  ;;  %v508_v20 = vpop.f32.mrf.mxu1 }
 0x152   : > { %v509_v16 = vadd.f32 %v508_v20, %v2092_v23 }
 0x153   : > { %v726_v54 = vadd.f32 %v705_v36, %v633_v27 }
 0x155   : > { %v2277_v53 = vadd.f32 %v859_v34, %v726_v54  ;;  %v1321_v58 = vpop.f32.mrf.mxu0 }
 0x158   : > { %v614_v59 = vpop.f32.mrf.mxu2  ;;  %v1192_v0 = vpop.f32.mrf.mxu3 }
 0x159   : > { %v634_v61 = vadd.f32 %v614_v59, %v509_v16  ;;  %v943_v19 = vpop.f32.mrf.mxu1 }
 0x15a   : > { %v988_v23 = vadd.f32 %v943_v19, %v2129_v1 }
 0x15b   : > { %v727_v55 = vadd.f32 %v707_v17, %v634_v61 }
 0x15c   : > { %1615 = vmatmul.msk.bf16.gmra.mxu1 %vm350_vm2, %v903_v5 }
 0x15d   : > { %1625 = vmatmul.msk.bf16.gmra.mxu2 %vm350_vm2, %v1017_v35  ;;  %v2288_v57 = vadd.f32 %v861_v40, %v727_v55  ;;  %v1324_v37 = vpop.f32.mrf.mxu0 }
 0x160   : > { %v1036_v34 = vpop.f32.mrf.mxu2  ;;  %v1195_v29 = vpop.f32.mrf.mxu3 }
 0x161   : > { %v1081_v3 = vadd.f32 %v1036_v34, %v988_v23  ;;  %v945_v45 = vpop.f32.mrf.mxu1 }
 0x162   : > { %v989_v40 = vadd.f32 %v945_v45, %v2141_v38 }
 0x163   : > { %v1235_v56 = vadd.f32 %v1190_v31, %v1081_v3 }
 0x165   : > { %v1359_v4 = vadd.f32 %v1314_v14, %v1235_v56  ;;  %v1326_v30 = vpop.f32.mrf.mxu0 }
 0x167   : > { %v1381_v43 = vadd.f32 %v2294_v46, %v1359_v4 }
 0x168   : > { %v1038_v1 = vpop.f32.mrf.mxu2  ;;  %v1197_v51 = vpop.f32.mrf.mxu3 }
 0x169   : > { %v1399_v36 = vmax.f32 %v1381_v43, 0.0  ;;  %v1082_v21 = vadd.f32 %v1038_v1, %v989_v40  ;;  %v948_v39 = vpop.f32.mrf.mxu1 }
 0x16a   : > { %v990_v38 = vadd.f32 %v948_v39, %v2149_v32 }
 0x16b   : > { %1417 = vst [vmem:[%s2301_s4] sm:$0xff] %v1399_v36  ;;  %v1236_v41 = vadd.f32 %v1192_v0, %v1082_v21 }
 0x16d   : > { %v1360_v14 = vadd.f32 %v1316_v62, %v1236_v41  ;;  %v1329_v50 = vpop.f32.mrf.mxu0 }
 0x16f   : > { %v1382_v63 = vadd.f32 %v2294_v46, %v1360_v14 }
 0x170   : > { %v1041_v52 = vpop.f32.mrf.mxu2  ;;  %v1200_v60 = vpop.f32.mrf.mxu3 }
 0x171   : > { %v1400_v22 = vmax.f32 %v1382_v63, 0.0  ;;  %v1083_v48 = vadd.f32 %v1041_v52, %v990_v38  ;;  %v950_v17 = vpop.f32.mrf.mxu1 }
 0x172   : > { %v991_v33 = vadd.f32 %v950_v17, %v2158_v10 }
 0x173   : > { %1418 = vst [vmem:[%s2301_s4 + $0x8] sm:$0xff] %v1400_v22  ;;  %v1237_v2 = vadd.f32 %v1195_v29, %v1083_v48 }
 0x175   : > { %v1361_v6 = vadd.f32 %v1319_v25, %v1237_v2  ;;  %v1331_v34 = vpop.f32.mrf.mxu0 }
 0x177   : > { %v1383_v42 = vadd.f32 %v2294_v46, %v1361_v6 }
 0x178   : > { %v1043_v49 = vpop.f32.mrf.mxu2  ;;  %v1202_v31 = vpop.f32.mrf.mxu3 }
 0x179   : > { %v1401_v62 = vmax.f32 %v1383_v42, 0.0  ;;  %v1084_v27 = vadd.f32 %v1043_v49, %v991_v33  ;;  %v953_v32 = vpop.f32.mrf.mxu1 }
 0x17a   : > { %v992_v16 = vadd.f32 %v953_v32, %v2167_v15 }
 0x17b   : > { %1419 = vst [vmem:[%s2301_s4 + $0x10] sm:$0xff] %v1401_v62  ;;  %v1238_v20 = vadd.f32 %v1197_v51, %v1084_v27 }
 0x17d   : > { %v1362_v54 = vadd.f32 %v1321_v58, %v1238_v20  ;;  %v1334_v51 = vpop.f32.mrf.mxu0 }
 0x17f   : > { %v1384_v7 = vadd.f32 %v2294_v46, %v1362_v54 }
 0x180   : > { %v1046_v59 = vpop.f32.mrf.mxu2  ;;  %v1205_v0 = vpop.f32.mrf.mxu3 }
 0x181   : > { %v1402_v25 = vmax.f32 %v1384_v7, 0.0  ;;  %v1085_v61 = vadd.f32 %v1046_v59, %v992_v16  ;;  %v955_v10 = vpop.f32.mrf.mxu1 }
 0x182   : > { %v993_v55 = vadd.f32 %v955_v10, %v2176_v11 }
 0x183   : > { %1420 = vst [vmem:[%s2301_s4 + $0x18] sm:$0xff] %v1402_v25  ;;  %v1239_v19 = vadd.f32 %v1200_v60, %v1085_v61 }
 0x185   : > { %v1363_v5 = vadd.f32 %v1324_v37, %v1239_v19  ;;  %v1336_v60 = vpop.f32.mrf.mxu0 }
 0x187   : > { %v1385_v35 = vadd.f32 %v2294_v46, %v1363_v5 }
 0x188   : > { %v1048_v23 = vpop.f32.mrf.mxu2  ;;  %v1207_v29 = vpop.f32.mrf.mxu3 }
 0x189   : > { %v1403_v58 = vmax.f32 %v1385_v35, 0.0  ;;  %v1086_v3 = vadd.f32 %v1048_v23, %v993_v55  ;;  %v958_v15 = vpop.f32.mrf.mxu1 }
 0x18a   : > { %v994_v43 = vadd.f32 %v958_v15, %v2184_v9 }
 0x18b   : > { %1421 = vst [vmem:[%s2301_s4 + $0x20] sm:$0xff] %v1403_v58  ;;  %v1240_v45 = vadd.f32 %v1202_v31, %v1086_v3 }
 0x18d   : > { %v1364_v56 = vadd.f32 %v1326_v30, %v1240_v45  ;;  %v1339_v31 = vpop.f32.mrf.mxu0 }
 0x18f   : > { %v1386_v4 = vadd.f32 %v2294_v46, %v1364_v56 }
 0x190   : > { %v1051_v40 = vpop.f32.mrf.mxu2  ;;  %v1210_v21 = vpop.f32.mrf.mxu3 }
 0x191   : > { %v1404_v1 = vmax.f32 %v1386_v4, 0.0  ;;  %v1087_v36 = vadd.f32 %v1051_v40, %v994_v43  ;;  %v960_v11 = vpop.f32.mrf.mxu1 }
 0x192   : > { %v995_v14 = vadd.f32 %v960_v11, %v2192_v44 }
 0x193   : > { %1422 = vst [vmem:[%s2301_s4 + $0x28] sm:$0xff] %v1404_v1  ;;  %v1241_v39 = vadd.f32 %v1205_v0, %v1087_v36 }
 0x195   : > { %v1365_v37 = vadd.f32 %v1329_v50, %v1241_v39  ;;  %v1341_v19 = vpop.f32.mrf.mxu0 }
 0x197   : > { %v1387_v41 = vadd.f32 %v2294_v46, %v1365_v37 }
 0x198   : > { %v1053_v63 = vpop.f32.mrf.mxu2  ;;  %v1212_v9 = vpop.f32.mrf.mxu3 }
 0x199   : > { %v1405_v38 = vmax.f32 %v1387_v41, 0.0  ;;  %v1088_v52 = vadd.f32 %v1053_v63, %v995_v14  ;;  %v963_v22 = vpop.f32.mrf.mxu1 }
 0x19a   : > { %v996_v30 = vadd.f32 %v963_v22, %v2200_v8 }
 0x19b   : > { %1423 = vst [vmem:[%s2301_s4 + $0x30] sm:$0xff] %v1405_v38  ;;  %v1242_v48 = vadd.f32 %v1207_v29, %v1088_v52 }
 0x19d   : > { %v1366_v17 = vadd.f32 %v1331_v34, %v1242_v48 }
 0x19f   : > { %v1388_v2 = vadd.f32 %v2294_v46, %v1366_v17 }
 0x1a0   : > { %v1056_v6 = vpop.f32.mrf.mxu2  ;;  %v1215_v62 = vpop.f32.mrf.mxu3 }
 0x1a1   : > { %v1406_v42 = vmax.f32 %v1388_v2, 0.0  ;;  %v1089_v33 = vadd.f32 %v1056_v6, %v996_v30  ;;  %v965_v49 = vpop.f32.mrf.mxu1 }
 0x1a2   : > { %v997_v20 = vadd.f32 %v965_v49, %v2211_v12 }
 0x1a3   : > { %1424 = vst [vmem:[%s2301_s4 + $0x38] sm:$0xff] %v1406_v42  ;;  %v1243_v44 = vadd.f32 %v1210_v21, %v1089_v33 }
 0x1a5   : > { %v1367_v27 = vadd.f32 %v1334_v51, %v1243_v44 }
 0x1a7   : > { %v1389_v32 = vadd.f32 %v2294_v46, %v1367_v27 }
 0x1a8   : > { %v1058_v54 = vpop.f32.mrf.mxu2  ;;  %v1217_v25 = vpop.f32.mrf.mxu3 }
 0x1a9   : > { %v1407_v50 = vmax.f32 %v1389_v32, 0.0  ;;  %v1090_v7 = vadd.f32 %v1058_v54, %v997_v20  ;;  %v968_v16 = vpop.f32.mrf.mxu1 }
 0x1aa   : > { %v998_v0 = vadd.f32 %v968_v16, %v2223_v18  ;;  %v1344_v18 = vpop.f32.mrf.mxu0 }
 0x1ab   : > { %1425 = vst [vmem:[%s2301_s4 + $0x40] sm:$0xff] %v1407_v50  ;;  %v1244_v8 = vadd.f32 %v1212_v9, %v1090_v7 }
 0x1ad   : > { %v1368_v59 = vadd.f32 %v1336_v60, %v1244_v8 }
 0x1af   : > { %v1390_v61 = vadd.f32 %v2294_v46, %v1368_v59 }
 0x1b0   : > { %v1061_v10 = vpop.f32.mrf.mxu2  ;;  %v1220_v29 = vpop.f32.mrf.mxu3 }
 0x1b1   : > { %v1408_v5 = vmax.f32 %v1390_v61, 0.0  ;;  %v1091_v35 = vadd.f32 %v1061_v10, %v998_v0  ;;  %v970_v55 = vpop.f32.mrf.mxu1 }
 0x1b2   : > { %v999_v58 = vadd.f32 %v970_v55, %v2234_v13  ;;  %v1346_v37 = vpop.f32.mrf.mxu0 }
 0x1b3   : > { %1426 = vst [vmem:[%s2301_s4 + $0x48] sm:$0xff] %v1408_v5  ;;  %v1245_v12 = vadd.f32 %v1215_v62, %v1091_v35 }
 0x1b5   : > { %v1369_v23 = vadd.f32 %v1339_v31, %v1245_v12 }
 0x1b7   : > { %v1391_v34 = vadd.f32 %v2294_v46, %v1369_v23 }
 0x1b8   : > { %v1063_v3 = vpop.f32.mrf.mxu2  ;;  %v1222_v13 = vpop.f32.mrf.mxu3 }
 0x1b9   : > { %v1409_v15 = vmax.f32 %v1391_v34, 0.0  ;;  %v1092_v45 = vadd.f32 %v1063_v3, %v999_v58  ;;  %v973_v56 = vpop.f32.mrf.mxu1 }
 0x1ba   : > { %v1000_v1 = vadd.f32 %v973_v56, %v2243_v47  ;;  %v1349_v17 = vpop.f32.mrf.mxu0 }
 0x1bb   : > { %1427 = vst [vmem:[%s2301_s4 + $0x50] sm:$0xff] %v1409_v15  ;;  %v1246_v4 = vadd.f32 %v1217_v25, %v1092_v45 }
 0x1bd   : > { %v1370_v43 = vadd.f32 %v1341_v19, %v1246_v4 }
 0x1bf   : > { %v1392_v40 = vadd.f32 %v2294_v46, %v1370_v43 }
 0x1c0   : > { %v1066_v36 = vpop.f32.mrf.mxu2  ;;  %v1225_v48 = vpop.f32.mrf.mxu3 }
 0x1c1   : > { %v1410_v21 = vmax.f32 %v1392_v40, 0.0  ;;  %v1093_v11 = vadd.f32 %v1066_v36, %v1000_v1  ;;  %v975_v51 = vpop.f32.mrf.mxu1 }
 0x1c2   : > { %v1001_v63 = vadd.f32 %v975_v51, %v2256_v28  ;;  %v1351_v32 = vpop.f32.mrf.mxu0 }
 0x1c3   : > { %1428 = vst [vmem:[%s2301_s4 + $0x58] sm:$0xff] %v1410_v21  ;;  %v1247_v39 = vadd.f32 %v1220_v29, %v1093_v11 }
 0x1c5   : > { %v1371_v41 = vadd.f32 %v1344_v18, %v1247_v39 }
 0x1c7   : > { %v1393_v14 = vadd.f32 %v2294_v46, %v1371_v41 }
 0x1c8   : > { %v1068_v38 = vpop.f32.mrf.mxu2  ;;  %v1227_v62 = vpop.f32.mrf.mxu3 }
 0x1c9   : > { %v1411_v52 = vmax.f32 %v1393_v14, 0.0  ;;  %v1094_v22 = vadd.f32 %v1068_v38, %v1001_v63  ;;  %v978_v9 = vpop.f32.mrf.mxu1 }
 0x1ca   : > { %v1002_v30 = vadd.f32 %v978_v9, %v2262_v26  ;;  %v1354_v19 = vpop.f32.mrf.mxu0 }
 0x1cb   : > { %1429 = vst [vmem:[%s2301_s4 + $0x60] sm:$0xff] %v1411_v52  ;;  %v1248_v47 = vadd.f32 %v1222_v13, %v1094_v22 }
 0x1cd   : > { %v1372_v60 = vadd.f32 %v1346_v37, %v1248_v47 }
 0x1cf   : > { %v1394_v2 = vadd.f32 %v2294_v46, %v1372_v60 }
 0x1d0   : > { %v1071_v6 = vpop.f32.mrf.mxu2  ;;  %v1230_v25 = vpop.f32.mrf.mxu3 }
 0x1d1   : > { %v1412_v42 = vmax.f32 %v1394_v2, 0.0  ;;  %v1095_v33 = vadd.f32 %v1071_v6, %v1002_v30  ;;  %v980_v49 = vpop.f32.mrf.mxu1 }
 0x1d2   : > { %v1003_v31 = vadd.f32 %v980_v49, %v2273_v24  ;;  %v1356_v29 = vpop.f32.mrf.mxu0 }
 0x1d3   : > { %1430 = vst [vmem:[%s2301_s4 + $0x68] sm:$0xff] %v1412_v42  ;;  %v1249_v28 = vadd.f32 %v1225_v48, %v1095_v33 }
 0x1d5   : > { %v1373_v44 = vadd.f32 %v1349_v17, %v1249_v28 }
 0x1d7   : > { %v1395_v27 = vadd.f32 %v2294_v46, %v1373_v44 }
 0x1d8   : > { %v1073_v20 = vpop.f32.mrf.mxu2  ;;  %v1232_v3 = vpop.f32.mrf.mxu3 }
 0x1d9   : > { %v1413_v54 = vmax.f32 %v1395_v27, 0.0  ;;  %v1096_v50 = vadd.f32 %v1073_v20, %v1003_v31  ;;  %v983_v7 = vpop.f32.mrf.mxu1 }
 0x1da   : > { %v1004_v59 = vadd.f32 %v983_v7, %v2277_v53 }
 0x1db   : > { %1431 = vst [vmem:[%s2301_s4 + $0x70] sm:$0xff] %v1413_v54  ;;  %v1250_v26 = vadd.f32 %v1227_v62, %v1096_v50 }
 0x1dd   : > { %v1374_v16 = vadd.f32 %v1351_v32, %v1250_v26 }
 0x1df   : > { %v1396_v8 = vadd.f32 %v2294_v46, %v1374_v16 }
 0x1e0   : > { %v1076_v61 = vpop.f32.mrf.mxu2 }
 0x1e1   : > { %v1414_v0 = vmax.f32 %v1396_v8, 0.0  ;;  %v1097_v10 = vadd.f32 %v1076_v61, %v1004_v59  ;;  %v985_v5 = vpop.f32.mrf.mxu1 }
 0x1e2   : > { %v1005_v12 = vadd.f32 %v985_v5, %v2288_v57 }
 0x1e3   : > { %1432 = vst [vmem:[%s2301_s4 + $0x78] sm:$0xff] %v1414_v0  ;;  %v1251_v24 = vadd.f32 %v1230_v25, %v1097_v10 }
 0x1e5   : > { %v1375_v35 = vadd.f32 %v1354_v19, %v1251_v24 }
 0x1e7   : > { %v1397_v55 = vadd.f32 %v2294_v46, %v1375_v35 }
 0x1e8   : > { %v1078_v23 = vpop.f32.mrf.mxu2 }
 0x1e9   : > { %v1415_v34 = vmax.f32 %v1397_v55, 0.0  ;;  %v1098_v58 = vadd.f32 %v1078_v23, %v1005_v12 }
 0x1eb   : > { %1433 = vst [vmem:[%s2301_s4 + $0x80] sm:$0xff] %v1415_v34  ;;  %v1252_v53 = vadd.f32 %v1232_v3, %v1098_v58 }
 0x1ed   : > { %v1376_v15 = vadd.f32 %v1356_v29, %v1252_v53 }
 0x1ef   : > { %v1398_v45 = vadd.f32 %v2294_v46, %v1376_v15 }
 0x1f1   : > { %v1416_v56 = vmax.f32 %v1398_v45, 0.0 }
 0x1f3   : > { %1434 = vst [vmem:[%s2301_s4 + $0x88] sm:$0xff] %v1416_v56 }
 0x1f4 PF: > { %s13_s16 = sadd.s32 1, %s1751_s16   ;;  %s2373_s12 = smov %s1743_s14 }
 0x1f5   : > { %p10_p7 = scmp.ge.s32.totalorder %s13_s16, 6   ;;  %s2374_s13 = smov %s1747_s15 }
 0x1f6   : > { %s2375_s14 = smov %s2378_s17  ;;  %s2376_s15 = smov %s2382_s18 }
 0x1f7   :  { %12 = sbr.rel (!%p10_p7) target bundleno = 3 (0x3), region = 71 }

</bundles_post_ra>
